<compile_context>
chip_gen: v6e
topology: v6e:2x2x1
jax: 0.10.0
libtpu: 0.0.40
codegen_flags: <defaults>
</compile_context>

<pallas_src>
import jax
import jax.numpy as jnp
from jax.experimental import pallas as pl
from jax.experimental.pallas import tpu as pltpu

_TILE_BYTE_BUDGET = 2 << 20   # ~2 MiB per tile (85%+ of HBM roofline plateau)
_LANE_MAX = 2048              # max lane-dim tile (multiple of 128)


def _copy_kernel(x_ref, o_ref):
    # Pure identity copy of a lane-dense tile. No reshape / relayout in-kernel.
    o_ref[...] = x_ref[...]


def _row_tile(rows, row_align, lane_width, itemsize, budget_bytes):
    """Row-tile: multiple of `row_align`, sized by the byte budget.

    Returns the full extent when `rows` is small (always a legal block size).
    With a cdiv grid the tile does NOT need to divide `rows`.
    """
    if rows <= row_align:
        return rows
    budget_rows = max(row_align, budget_bytes // (lane_width * itemsize))
    tr = max(row_align, (budget_rows // row_align) * row_align)
    tr = min(tr, (rows // row_align) * row_align)
    return tr


def _identity_copy_2d(x2d, dim_sems):
    """Tiled identity copy of a 2D array via Pallas (lane dim last)."""
    rows, cols = x2d.shape
    n_grid = tuple(pl.cdiv(d, t) for d, t in
                   zip((rows, cols), x2d._tile_shape))  # placeholder, unused
    raise NotImplementedError  # (never called; kept out of the public path)


def _materialized_copy(x2):
    """Identity copy of an already-flattened (N, F) array through VMEM."""
    N, F = x2.shape
    total = N * F
    itemsize = jnp.dtype(x2.dtype).itemsize
    # sublane alignment: 8 for f32, 16 for bf16, 32 for int8
    sub_align = max(8, 32 // itemsize)
    cparams = pltpu.CompilerParams(
        # Independent copies -> let megacore (v7x) shard the grid.
        # TODO(synk): on v7x, verify in xprof both TCs participate; switch to
        # pltpu.CORE_PARALLEL on the large axis if not.
        dimension_semantics=None,  # filled per-path below
        vmem_limit_bytes=32 << 20,
    )

    # ---- Preferred path: lane-dense flat slab (rows, L), L | total ---------
    L = next((c for c in (2048, 1024, 512, 256, 128) if total % c == 0), None)
    if L is not None:
        rows = total // L
        flat = x2.reshape(rows, L)
        TR = _row_tile(rows, sub_align, L, itemsize, _TILE_BYTE_BUDGET)
        grid = (pl.cdiv(rows, TR),)
        out = pl.pallas_call(
            _copy_kernel,
            out_shape=jax.ShapeDtypeStruct((rows, L), x2.dtype),
            grid=grid,
            in_specs=[pl.BlockSpec((TR, L), lambda i: (i, 0))],
            out_specs=pl.BlockSpec((TR, L), lambda i: (i, 0)),
            compiler_params=pltpu.CompilerParams(
                dimension_semantics=("parallel",),
                vmem_limit_bytes=32 << 20,
            ),
        )(flat)
        return out.reshape(N, F)   # metadata-only reshape back

    # ---- Fallback: tile (N, F) directly with a cdiv grid / ragged tail -----
    # (only reached when total is not a multiple of 128)
    TF = F if F <= _LANE_MAX else _LANE_MAX          # full-extent or 128-mult
    TN = _row_tile(N, sub_align, TF, itemsize, _TILE_BYTE_BUDGET)
    grid = (pl.cdiv(N, TN), pl.cdiv(F, TF))
    return pl.pallas_call(
        _copy_kernel,
        out_shape=jax.ShapeDtypeStruct((N, F), x2.dtype),
        grid=grid,
        in_specs=[pl.BlockSpec((TN, TF), lambda i, j: (i, j))],
        out_specs=pl.BlockSpec((TN, TF), lambda i, j: (i, j)),
        compiler_params=pltpu.CompilerParams(
            dimension_semantics=("parallel", "parallel"),
            vmem_limit_bytes=32 << 20,
        ),
    )(x2)


def flatten_pallas(x, materialize=False):
    """Equivalent of torch.flatten(x, 1).

    Default: returns the metadata-only reshape view (zero HBM traffic) — the
    correct production path.  Set materialize=True to force a Pallas identity
    copy into a fresh buffer (e.g. when a consumer requires materialization).
    """
    N = x.shape[0]
    F = 1
    for d in x.shape[1:]:
        F *= d

    x2 = x.reshape(N, F)           # free: implements torch.flatten(x, 1)
    if not materialize or N == 0 or F == 0:
        return x2
    # NOTE: if the caller can donate `x`, input_output_aliases={0: 0} on the
    # pallas_call would halve peak HBM footprint for the copy path.
    return _materialized_copy(x2)


if __name__ == "__main__":
    key = jax.random.PRNGKey(0)
    N, C, H, W = 2, 4, 16, 16
    x = jax.random.normal(key, (N, C, H, W), dtype=jnp.float32)
    y_ref = x.reshape(N, C * H * W)

    # Default (recommended) path: free reshape view.
    y_view = flatten_pallas(x)
    assert y_view.shape == (N, C * H * W)
    assert jnp.array_equal(y_view, y_ref)

    # Explicitly-materialized path: exercises the Pallas copy kernel.
    y_copy = flatten_pallas(x, materialize=True)
    jax.block_until_ready(y_copy)
    assert y_copy.shape == (N, C * H * W)
    assert jnp.array_equal(y_copy, y_ref)

    print("KERNEL_OK")
</pallas_src>

<mosaic_0001>
module attributes {stable_mosaic.version = 11 : i64} {
  func.func @_copy_kernel(%arg0: i32, %arg1: memref<1x2048xf32, #tpu.memory_space<vmem>>, %arg2: memref<1x2048xf32, #tpu.memory_space<vmem>>) attributes {dimension_semantics = [#tpu.dimension_semantics<parallel>], iteration_bounds = array<i64: 1>, scalar_prefetch = 0 : i64, scratch_operands = 0 : i64, tpu.core_type = #tpu.core_type<tc>, window_params = [{transform_indices = @transform_0, window_bounds = array<i64: 1, 2048>}, {transform_indices = @transform_1, window_bounds = array<i64: 1, 2048>}]} {
    %c0 = arith.constant 0 : index
    %c0_0 = arith.constant 0 : index
    %0 = vector.load %arg1[%c0, %c0_0] : memref<1x2048xf32, #tpu.memory_space<vmem>>, vector<1x2048xf32>
    %c0_1 = arith.constant 0 : index
    %c0_2 = arith.constant 0 : index
    %1 = vector.load %arg2[%c0_1, %c0_2] : memref<1x2048xf32, #tpu.memory_space<vmem>>, vector<1x2048xf32>
    tpu.vector_store %arg2[%c0_1, %c0_2], %0 {strides = array<i32>} : memref<1x2048xf32, #tpu.memory_space<vmem>>, vector<1x2048xf32>,
    return
  }
  func.func @transform_0(%arg0: i32) -> (i32, i32) {
    %c0_i32 = arith.constant 0 : i32
    %c0_i32_0 = arith.constant 0 : i32
    return %arg0, %c0_i32 : i32, i32
  }
  func.func @transform_1(%arg0: i32) -> (i32, i32) {
    %c0_i32 = arith.constant 0 : i32
    %c0_i32_0 = arith.constant 0 : i32
    return %arg0, %c0_i32 : i32, i32
  }
}

</mosaic_0001>

<bundles_post_ra>
// kernel: tpu_custom_call.1
= control target key start
LH: loop header
LB: loop body
LE: loop exit
PB: predicated region body
PF: predicated region fallthrough
CT: control target
= control target key end

     0   :  { %6 = vsyncpa [#allocation3], 0  ;;  %s104_s0 = inlined_call_operand.hbm [shape: f32[1,2048], index: 0, kind: input, shape index: {}]   ;;  %s105_s1 = inlined_call_operand.hbm [shape: f32[1,2048], index: 1, kind: output, shape index: {}]  }
   0x1   :  { %7 = vsyncpa [#allocation4], 0  ;;  %s86_s6 = smov [#allocation2]  }
   0x2   :  { %s14_s7 = sshll.u32 %s86_s6, 4  ;;  %s15_s7 = int_to_ptr.vmem [resolvable:$true] %s14_s7 }
   0x3   :  { %s50_s8 = scalar_lea.vmem %s15_s7, 256  ;;  %p55_p1 = scmp.lt.s32.totalorder %s15_s7, %s15_s7 }
   0x4   :  { %p51_p0 = scmp.ne.s32.totalorder %s15_s7, %s50_s8  ;;  %p56_p2 = scmp.lt.s32.totalorder %s50_s8, %s50_s8 }
   0x6   :  { %p57_p3 = por %p56_p2, %p55_p1 }
   0x8   :  { %p58_p4 = pnand %p57_p3, %p51_p0 }
   0xa   :  { %61 = shalt.err (!%p58_p4)
}
   0xb   :  { %17 = dma.hbm_to_vmem [thread:$0]  %s104_s0, 256, %s15_s7, [#allocation3]  }
   0xc   :  { %82 = dma.done.wait [#allocation3], 256  }
   0xd   :  { %83 = vsyncadd [#allocation3], 4294967040  ;;  %s87_s11 = smov [#allocation5]   ;;  %v21_v0 = vld [vmem:[#allocation2] sm:$0xff]  ;;  %v22_v1 = vld [vmem:[#allocation2 + $0x8] sm:$0xff] }
   0xe   :  { %s31_s12 = sshll.u32 %s87_s11, 4  ;;  %23 = vst [vmem:[#allocation5] sm:$0xff] %v21_v0  ;;  %24 = vst [vmem:[#allocation5 + $0x8] sm:$0xff] %v22_v1  ;;  %s32_s12 = int_to_ptr.vmem [resolvable:$true] %s31_s12 }
   0xf   :  { %s62_s13 = scalar_lea.vmem %s32_s12, 256  ;;  %p67_p6 = scmp.lt.s32.totalorder %s32_s12, %s32_s12 }
  0x10   :  { %p63_p5 = scmp.ne.s32.totalorder %s32_s12, %s62_s13  ;;  %p68_p7 = scmp.lt.s32.totalorder %s62_s13, %s62_s13 }
  0x12   :  { %p69_p8 = por %p68_p7, %p67_p6 }
  0x14   :  { %p70_p9 = pnand %p69_p8, %p63_p5 }
  0x16   :  { %73 = shalt.err (!%p70_p9)
}
  0x17   :  { %34 = dma.vmem_to_hbm [thread:$0]  %s32_s12, 256, %s105_s1, [#allocation4]  }
  0x18   :  { %84 = dma.done.wait [#allocation4], 256  }
  0x19   :  { %85 = vsyncadd [#allocation4], 4294967040 }
  0x1a   :  { %38 = vsyncpa [#allocation3], 1 }
  0x1b   :  { %39 = vsyncpa [#allocation4], 1 }

</bundles_post_ra>
